<compile_context>
chip_gen: v7x
topology: tpu7x:2x2x1
jax: 0.10.0
libtpu: 0.0.40
codegen_flags: <defaults>
</compile_context>

<pallas_src>
import jax
import jax.numpy as jnp
from jax.experimental import pallas as pl
from jax.experimental.pallas import tpu as pltpu


def _rowwise_sqdiff_sum(a, b):
    """Per-row sum((a - b)**2) for 2-D (B, D) arrays, accumulated in f32.

    Returns an f32 array of shape (B,).
    """
    assert a.shape == b.shape and a.ndim == 2
    B, D = a.shape

    # --- tile selection ---------------------------------------------------
    # Batch tile: full batch if small (a full-dim block is always legal),
    # otherwise 256 rows (multiple of 8 sublanes).
    TB = B if B <= 256 else 256
    # Feature tile: full feature dim when it is already modest, otherwise
    # 1024 lanes (>= 512 lanes keeps the DMA pipeline near HBM roofline).
    TD = D if D <= 2048 else 1024

    nb = pl.cdiv(B, TB)
    nk = pl.cdiv(D, TD)
    lane_mask_needed = (D % TD) != 0  # static

    def kernel(a_ref, b_ref, out_ref, acc_ref):
        k = pl.program_id(1)

        @pl.when(k == 0)
        def _init():
            acc_ref[...] = jnp.zeros_like(acc_ref)

        # Upcast inside the kernel; accumulate in f32.
        dx = a_ref[...].astype(jnp.float32) - b_ref[...].astype(jnp.float32)
        if lane_mask_needed:
            col = k * TD + jax.lax.broadcasted_iota(jnp.int32, (TB, TD), 1)
            dx = jnp.where(col < D, dx, 0.0)
        acc_ref[...] += dx * dx  # pure VPU work in the hot loop

        @pl.when(k == nk - 1)
        def _finalize():
            # One cross-lane (XLU) reduce per batch tile.
            out_ref[...] = jnp.sum(acc_ref[...], axis=1, keepdims=True)

    itemsize = jnp.dtype(a.dtype).itemsize
    cost = pl.CostEstimate(
        flops=3 * B * D,            # sub, mul, add per element
        transcendentals=0,
        bytes_accessed=2 * B * D * itemsize + B * 4,
    )

    out = pl.pallas_call(
        kernel,
        out_shape=jax.ShapeDtypeStruct((B, 1), jnp.float32),
        grid_spec=pltpu.PrefetchScalarGridSpec(
            num_scalar_prefetch=0,
            grid=(nb, nk),
            in_specs=[
                pl.BlockSpec((TB, TD), lambda i, k: (i, k)),
                pl.BlockSpec((TB, TD), lambda i, k: (i, k)),
            ],
            out_specs=pl.BlockSpec((TB, 1), lambda i, k: (i, 0)),
            scratch_shapes=[pltpu.VMEM((TB, TD), jnp.float32)],
        ),
        compiler_params=pltpu.CompilerParams(
            dimension_semantics=("parallel", "arbitrary"),
        ),
        cost_estimate=cost,
    )(a, b)
    return out[:, 0]


def _rowwise_mse(a, b):
    """mean((flatten(a) - flatten(b))**2, axis=1) -> (B,) f32."""
    B = a.shape[0]
    a2 = a.reshape(B, -1)
    b2 = b.reshape(B, -1)
    D = a2.shape[1]
    return _rowwise_sqdiff_sum(a2, b2) / jnp.float32(D)


@jax.jit
def distance_loss(input1, input2, output1, output2):
    """Pallas equivalent of distance_loss.forward (margin is unused there)."""
    d_orig = _rowwise_mse(input1, input2)
    d_out = _rowwise_mse(output1, output2)
    # Tiny O(B) epilogue in plain JAX.
    return jnp.mean(jnp.abs(d_orig - d_out))


def _ref_loss(i1, i2, o1, o2):
    f = lambda a: a.reshape(a.shape[0], -1).astype(jnp.float32)
    d1 = jnp.mean((f(i1) - f(i2)) ** 2, axis=1)
    d2 = jnp.mean((f(o1) - f(o2)) ** 2, axis=1)
    return jnp.mean(jnp.abs(d1 - d2))


if __name__ == "__main__":
    key = jax.random.PRNGKey(0)
    k1, k2, k3, k4 = jax.random.split(key, 4)

    # --- test 1: shapes consistent with the module's generic flatten() use ---
    input1 = jax.random.normal(k1, (2, 4, 16, 16), dtype=jnp.float32)
    input2 = jax.random.normal(k2, (2, 4, 16, 16), dtype=jnp.float32)
    output1 = jax.random.normal(k3, (2, 32), dtype=jnp.float32)
    output2 = jax.random.normal(k4, (2, 32), dtype=jnp.float32)

    loss = distance_loss(input1, input2, output1, output2)
    jax.block_until_ready(loss)
    expected = _ref_loss(input1, input2, output1, output2)
    assert jnp.allclose(loss, expected, rtol=1e-5, atol=1e-6), (loss, expected)

    # --- test 2: ragged feature dim (exercises feature tiling + lane mask) ---
    ka, kb, kc, kd = jax.random.split(jax.random.PRNGKey(1), 4)
    a1 = jax.random.normal(ka, (2, 3, 37, 37), dtype=jnp.float32)   # D = 4107
    a2 = jax.random.normal(kb, (2, 3, 37, 37), dtype=jnp.float32)
    b1 = jax.random.normal(kc, (2, 48), dtype=jnp.float32)
    b2 = jax.random.normal(kd, (2, 48), dtype=jnp.float32)
    loss2 = distance_loss(a1, a2, b1, b2)
    jax.block_until_ready(loss2)
    expected2 = _ref_loss(a1, a2, b1, b2)
    assert jnp.allclose(loss2, expected2, rtol=1e-5, atol=1e-6), (loss2, expected2)

    # --- test 3: bf16 inputs go through the kernel in native dtype ----------
    i1b, i2b = input1.astype(jnp.bfloat16), input2.astype(jnp.bfloat16)
    o1b, o2b = output1.astype(jnp.bfloat16), output2.astype(jnp.bfloat16)
    loss3 = distance_loss(i1b, i2b, o1b, o2b)
    jax.block_until_ready(loss3)
    expected3 = _ref_loss(i1b, i2b, o1b, o2b)
    assert jnp.allclose(loss3, expected3, rtol=1e-3, atol=1e-5), (loss3, expected3)

    print("KERNEL_OK")
</pallas_src>

<mosaic_0001>
module attributes {stable_mosaic.version = 11 : i64} {
  func.func @kernel(%arg0: i32, %arg1: i32, %arg2: memref<2x1024xf32, #tpu.memory_space<vmem>>, %arg3: memref<2x1024xf32, #tpu.memory_space<vmem>>, %arg4: memref<2x1xf32, #tpu.memory_space<vmem>>, %arg5: memref<2x1024xf32, #tpu.memory_space<vmem>>) attributes {dimension_semantics = [#tpu.dimension_semantics<parallel>, #tpu.dimension_semantics<arbitrary>], iteration_bounds = array<i64: 1, 1>, scalar_prefetch = 0 : i64, scratch_operands = 1 : i64, tpu.core_type = #tpu.core_type<tc>, window_params = [{transform_indices = @transform_0, window_bounds = array<i64: 2, 1024>}, {transform_indices = @transform_1, window_bounds = array<i64: 2, 1024>}, {transform_indices = @transform_2, window_bounds = array<i64: 2, 1>}]} {
    %c0_i32 = arith.constant 0 : i32
    %0 = arith.cmpi eq, %arg1, %c0_i32 : i32
    %1 = arith.extui %0 : i1 to i32
    %c0_i32_0 = arith.constant 0 : i32
    %2 = arith.cmpi ne, %1, %c0_i32_0 : i32
    scf.if %2 {
      %cst = arith.constant 0.000000e+00 : f32
      %13 = vector.broadcast %cst : f32 to vector<2x1024xf32>
      %c0_10 = arith.constant 0 : index
      %c0_11 = arith.constant 0 : index
      %14 = vector.load %arg5[%c0_10, %c0_11] : memref<2x1024xf32, #tpu.memory_space<vmem>>, vector<2x1024xf32>
      tpu.vector_store %arg5[%c0_10, %c0_11], %13 {strides = array<i32>} : memref<2x1024xf32, #tpu.memory_space<vmem>>, vector<2x1024xf32>,
    } else {
    }
    %c0 = arith.constant 0 : index
    %c0_1 = arith.constant 0 : index
    %3 = vector.load %arg2[%c0, %c0_1] : memref<2x1024xf32, #tpu.memory_space<vmem>>, vector<2x1024xf32>
    %c0_2 = arith.constant 0 : index
    %c0_3 = arith.constant 0 : index
    %4 = vector.load %arg3[%c0_2, %c0_3] : memref<2x1024xf32, #tpu.memory_space<vmem>>, vector<2x1024xf32>
    %5 = arith.subf %3, %4 : vector<2x1024xf32>
    %c0_4 = arith.constant 0 : index
    %c0_5 = arith.constant 0 : index
    %6 = vector.load %arg5[%c0_4, %c0_5] : memref<2x1024xf32, #tpu.memory_space<vmem>>, vector<2x1024xf32>
    %7 = arith.mulf %5, %5 : vector<2x1024xf32>
    %8 = arith.addf %6, %7 : vector<2x1024xf32>
    %c0_6 = arith.constant 0 : index
    %c0_7 = arith.constant 0 : index
    %9 = vector.load %arg5[%c0_6, %c0_7] : memref<2x1024xf32, #tpu.memory_space<vmem>>, vector<2x1024xf32>
    tpu.vector_store %arg5[%c0_6, %c0_7], %8 {strides = array<i32>} : memref<2x1024xf32, #tpu.memory_space<vmem>>, vector<2x1024xf32>,
    %c0_i32_8 = arith.constant 0 : i32
    %10 = arith.cmpi eq, %arg1, %c0_i32_8 : i32
    %11 = arith.extui %10 : i1 to i32
    %c0_i32_9 = arith.constant 0 : i32
    %12 = arith.cmpi ne, %11, %c0_i32_9 : i32
    scf.if %12 {
      %c0_10 = arith.constant 0 : index
      %c0_11 = arith.constant 0 : index
      %13 = vector.load %arg5[%c0_10, %c0_11] : memref<2x1024xf32, #tpu.memory_space<vmem>>, vector<2x1024xf32>
      %cst = arith.constant dense<0.000000e+00> : vector<2xf32>
      %14 = vector.multi_reduction <add>, %13, %cst [1] : vector<2x1024xf32> to vector<2xf32>
      %15 = vector.shape_cast %14 : vector<2xf32> to vector<2x1xf32>
      %c0_12 = arith.constant 0 : index
      %c0_13 = arith.constant 0 : index
      %16 = vector.load %arg4[%c0_12, %c0_13] : memref<2x1xf32, #tpu.memory_space<vmem>>, vector<2x1xf32>
      tpu.vector_store %arg4[%c0_12, %c0_13], %15 {strides = array<i32>} : memref<2x1xf32, #tpu.memory_space<vmem>>, vector<2x1xf32>,
    } else {
    }
    return
  }
  func.func @transform_0(%arg0: i32, %arg1: i32) -> (i32, i32) {
    %c0_i32 = arith.constant 0 : i32
    return %arg0, %arg1 : i32, i32
  }
  func.func @transform_1(%arg0: i32, %arg1: i32) -> (i32, i32) {
    %c0_i32 = arith.constant 0 : i32
    return %arg0, %arg1 : i32, i32
  }
  func.func @transform_2(%arg0: i32, %arg1: i32) -> (i32, i32) {
    %c0_i32 = arith.constant 0 : i32
    %c0_i32_0 = arith.constant 0 : i32
    return %arg0, %c0_i32 : i32, i32
  }
}

module attributes {stable_mosaic.version = 11 : i64} {
  func.func @kernel(%arg0: i32, %arg1: i32, %arg2: memref<2x32xf32, #tpu.memory_space<vmem>>, %arg3: memref<2x32xf32, #tpu.memory_space<vmem>>, %arg4: memref<2x1xf32, #tpu.memory_space<vmem>>, %arg5: memref<2x32xf32, #tpu.memory_space<vmem>>) attributes {dimension_semantics = [#tpu.dimension_semantics<parallel>, #tpu.dimension_semantics<arbitrary>], iteration_bounds = array<i64: 1, 1>, scalar_prefetch = 0 : i64, scratch_operands = 1 : i64, tpu.core_type = #tpu.core_type<tc>, window_params = [{transform_indices = @transform_0, window_bounds = array<i64: 2, 32>}, {transform_indices = @transform_1, window_bounds = array<i64: 2, 32>}, {transform_indices = @transform_2, window_bounds = array<i64: 2, 1>}]} {
    %c0_i32 = arith.constant 0 : i32
    %0 = arith.cmpi eq, %arg1, %c0_i32 : i32
    %1 = arith.extui %0 : i1 to i32
    %c0_i32_0 = arith.constant 0 : i32
    %2 = arith.cmpi ne, %1, %c0_i32_0 : i32
    scf.if %2 {
      %cst = arith.constant 0.000000e+00 : f32
      %13 = vector.broadcast %cst : f32 to vector<2x32xf32>
      %c0_10 = arith.constant 0 : index
      %c0_11 = arith.constant 0 : index
      %14 = vector.load %arg5[%c0_10, %c0_11] : memref<2x32xf32, #tpu.memory_space<vmem>>, vector<2x32xf32>
      tpu.vector_store %arg5[%c0_10, %c0_11], %13 {strides = array<i32>} : memref<2x32xf32, #tpu.memory_space<vmem>>, vector<2x32xf32>,
    } else {
    }
    %c0 = arith.constant 0 : index
    %c0_1 = arith.constant 0 : index
    %3 = vector.load %arg2[%c0, %c0_1] : memref<2x32xf32, #tpu.memory_space<vmem>>, vector<2x32xf32>
    %c0_2 = arith.constant 0 : index
    %c0_3 = arith.constant 0 : index
    %4 = vector.load %arg3[%c0_2, %c0_3] : memref<2x32xf32, #tpu.memory_space<vmem>>, vector<2x32xf32>
    %5 = arith.subf %3, %4 : vector<2x32xf32>
    %c0_4 = arith.constant 0 : index
    %c0_5 = arith.constant 0 : index
    %6 = vector.load %arg5[%c0_4, %c0_5] : memref<2x32xf32, #tpu.memory_space<vmem>>, vector<2x32xf32>
    %7 = arith.mulf %5, %5 : vector<2x32xf32>
    %8 = arith.addf %6, %7 : vector<2x32xf32>
    %c0_6 = arith.constant 0 : index
    %c0_7 = arith.constant 0 : index
    %9 = vector.load %arg5[%c0_6, %c0_7] : memref<2x32xf32, #tpu.memory_space<vmem>>, vector<2x32xf32>
    tpu.vector_store %arg5[%c0_6, %c0_7], %8 {strides = array<i32>} : memref<2x32xf32, #tpu.memory_space<vmem>>, vector<2x32xf32>,
    %c0_i32_8 = arith.constant 0 : i32
    %10 = arith.cmpi eq, %arg1, %c0_i32_8 : i32
    %11 = arith.extui %10 : i1 to i32
    %c0_i32_9 = arith.constant 0 : i32
    %12 = arith.cmpi ne, %11, %c0_i32_9 : i32
    scf.if %12 {
      %c0_10 = arith.constant 0 : index
      %c0_11 = arith.constant 0 : index
      %13 = vector.load %arg5[%c0_10, %c0_11] : memref<2x32xf32, #tpu.memory_space<vmem>>, vector<2x32xf32>
      %cst = arith.constant dense<0.000000e+00> : vector<2xf32>
      %14 = vector.multi_reduction <add>, %13, %cst [1] : vector<2x32xf32> to vector<2xf32>
      %15 = vector.shape_cast %14 : vector<2xf32> to vector<2x1xf32>
      %c0_12 = arith.constant 0 : index
      %c0_13 = arith.constant 0 : index
      %16 = vector.load %arg4[%c0_12, %c0_13] : memref<2x1xf32, #tpu.memory_space<vmem>>, vector<2x1xf32>
      tpu.vector_store %arg4[%c0_12, %c0_13], %15 {strides = array<i32>} : memref<2x1xf32, #tpu.memory_space<vmem>>, vector<2x1xf32>,
    } else {
    }
    return
  }
  func.func @transform_0(%arg0: i32, %arg1: i32) -> (i32, i32) {
    %c0_i32 = arith.constant 0 : i32
    return %arg0, %arg1 : i32, i32
  }
  func.func @transform_1(%arg0: i32, %arg1: i32) -> (i32, i32) {
    %c0_i32 = arith.constant 0 : i32
    return %arg0, %arg1 : i32, i32
  }
  func.func @transform_2(%arg0: i32, %arg1: i32) -> (i32, i32) {
    %c0_i32 = arith.constant 0 : i32
    %c0_i32_0 = arith.constant 0 : i32
    return %arg0, %c0_i32 : i32, i32
  }
}

</mosaic_0001>

<bundles_post_ra>
// kernel: distance_loss.3
= control target key start
LH: loop header
LB: loop body
LE: loop exit
PB: predicated region body
PF: predicated region fallthrough
CT: control target
= control target key end

     0   :  { %vm15_vm0 = vcmask 254976   ;;  %v39_v0 = vmov 0.0   ;;  %vm32_vm1 = vcmask 1024   ;;  %s64_s0 = inlined_call_operand.vmem [shape: f32[2,32], index: 0, kind: input, shape index: {}]   ;;  %s65_s1 = inlined_call_operand.vmem [shape: f32[2,32], index: 1, kind: input, shape index: {}]   ;;  %s66_s2 = inlined_call_operand.vmem [shape: f32[2,1], index: 2, kind: output, shape index: {}]  }
   0x1   :  { %16 = vst.msk [vmem:[#allocation2] sm:$0x3] %vm15_vm0, %v39_v0  ;;  %v17_v1 = vld [vmem:[%s64_s0] sm:$0x3] }
   0x2   :  { %v18_v2 = vld [vmem:[%s65_s1] sm:$0x3] }
   0x3   :  { %v19_v3 = vsub.f32 %v17_v1, %v18_v2 }
   0x5   :  { %v21_v4 = vmul.f32 %v19_v3, %v19_v3 }
   0x8   :  { %v20_v5 = vld [vmem:[#allocation2] sm:$0x3] }
   0x9   :  { %v22_v6 = vadd.f32 %v21_v4, %v20_v5 }
   0xb   :  { %24 = vst.msk [vmem:[#allocation2] sm:$0x3] %vm15_vm0, %v22_v6 }
  0x12   :  { %v28_v7 = vld [vmem:[#allocation2] sm:$0x3] }
  0x13   :  { %v29_v8 = vsel %vm15_vm0, %v28_v7, 0.0 }
  0x14   :  { %30 = vadd.xlane.f32.xlu0 %v29_v8 }
  0xa1   :  { %v31_v9 = vpop.xlane.xlu0 %30 }
  0xa2   :  { %33 = vst.msk [vmem:[%s66_s2] sm:$0x3] %vm32_vm1, %v31_v9 }

// kernel: distance_loss.2
= control target key start
LH: loop header
LB: loop body
LE: loop exit
PB: predicated region body
PF: predicated region fallthrough
CT: control target
= control target key end

     0   :  { %v42_v0 = vlaneseq  ;;  %v105_v4 = vmov 1983009808   ;;  %vm80_vm0 = vcmask 1041408   ;;  %vm98_vm1 = vcmask 1024   ;;  %s144_s0 = inlined_call_operand.vmem [shape: f32[2,1024], index: 0, kind: input, shape index: {}]   ;;  %s145_s1 = inlined_call_operand.vmem [shape: f32[2,1024], index: 1, kind: input, shape index: {}]   ;;  %s146_s2 = inlined_call_operand.vmem [shape: f32[2,1], index: 2, kind: output, shape index: {}]  }
   0x1   :  { %v17_v1 = vld [vmem:[%s144_s0] sm:$0xff]  ;;  %v18_v2 = vld [vmem:[%s144_s0 + $0x8] sm:$0xff]  ;;  %v40_v5 = vunpack.c.l.s4 %v105_v4 }
   0x2   :  { %v19_v3 = vld [vmem:[%s145_s1] sm:$0xff]  ;;  %v20_v6 = vld [vmem:[%s145_s1 + $0x8] sm:$0xff]  ;;  %v43_v8 = vshrl.u32 %v42_v0, 7 }
   0x3   :  { %v21_v7 = vsub.f32 %v17_v1, %v19_v3  ;;  %v22_v9 = vsub.f32 %v18_v2, %v20_v6  ;;  %v41_v10 = vunpack.c.0.s8 %v40_v5 }
   0x5   :  { %v25_v11 = vmul.f32 %v21_v7, %v21_v7  ;;  %v26_v12 = vmul.f32 %v22_v9, %v22_v9  ;;  %v44_v13 = vsub.s32 %v41_v10, %v43_v8 }
   0x7   :  { %v38_v14 = vcombine.high %v25_v11, %v25_v11  ;;  %v45_v15 = vrot.slane %v25_v11, %v44_v13  ;;  %v55_v18 = vcombine.high %v26_v12, %v26_v12  ;;  %v62_v19 = vrot.slane %v26_v12, %v44_v13 }
   0x9   :  { %v52_v16 = vrot.slane %v38_v14, %v44_v13  ;;  %v53_v17 = vcombine.high %v45_v15, %v45_v15  ;;  %v81_v20 = vsel %vm80_vm0, %v45_v15, 0.0  ;;  %v69_v25 = vrot.slane %v55_v18, %v44_v13 }
   0xa   :  { %v70_v26 = vcombine.high %v62_v19, %v62_v19  ;;  %v88_v29 = vsel %vm80_vm0, %v62_v19, 0.0 }
   0xb   :  { %v54_v21 = vcombine.high %v52_v16, %v52_v16  ;;  %v82_v22 = vsel %vm80_vm0, %v53_v17, 0.0  ;;  %v84_v23 = vsel %vm80_vm0, %v52_v16, 0.0  ;;  %v71_v31 = vcombine.high %v69_v25, %v69_v25 }
   0xc   :  { %v83_v24 = vadd.f32 %v82_v22, %v81_v20  ;;  %v90_v32 = vsel %vm80_vm0, %v70_v26, 0.0  ;;  %v92_v34 = vsel %vm80_vm0, %v69_v25, 0.0 }
   0xd   :  { %v86_v27 = vsel %vm80_vm0, %v54_v21, 0.0  ;;  %v94_v36 = vsel %vm80_vm0, %v71_v31, 0.0 }
   0xe   :  { %v85_v28 = vadd.f32 %v84_v23, %v83_v24 }
  0x10   :  { %v87_v30 = vadd.f32 %v86_v27, %v85_v28 }
  0x12   :  { %v89_v33 = vadd.f32 %v88_v29, %v87_v30 }
  0x14   :  { %v91_v35 = vadd.f32 %v90_v32, %v89_v33 }
  0x16   :  { %v93_v37 = vadd.f32 %v92_v34, %v91_v35 }
  0x18   :  { %v95_v38 = vadd.f32 %v94_v36, %v93_v37 }
  0x1a   :  { %96 = vadd.xlane.f32.xlu0 %v95_v38 }
  0xa7   :  { %v97_v39 = vpop.xlane.xlu0 %96 }
  0xa8   :  { %99 = vst.msk [vmem:[%s146_s2] sm:$0x3] %vm98_vm1, %v97_v39 }

</bundles_post_ra>
